<compile_context>
chip_gen: v7x
topology: tpu7x:2x2x1
jax: 0.10.0
libtpu: 0.0.40
codegen_flags: <defaults>
</compile_context>

<pallas_src>
import functools

import jax
import jax.numpy as jnp
import numpy as np
from jax import lax
from jax.experimental import pallas as pl
from jax.experimental.pallas import tpu as pltpu


def _round_up(x, m):
    return ((x + m - 1) // m) * m


def _vmem_capacity_bytes():
    """Physical VMEM per TensorCore; conservative 64 MiB fallback (= v7x)."""
    try:
        cap = getattr(pltpu.get_tpu_info(), "vmem_capacity_bytes", None)
        if cap:
            return int(cap)
    except Exception:
        pass
    return 64 * 1024 * 1024


def _choose_tile_n(n, d, p_pad, proto_bytes, vmem_limit_bytes):
    """Largest N-tile (multiple of 32: int8 sublane packing of the labels tile,
    bf16 packing of the matmul operand) such that double-buffered streamed
    tiles + f32 intermediates + the resident prototype/weight blocks fit the
    scoped-VMEM limit with headroom for compiler scratch."""
    # Resident blocks (constant index_map); Pallas still double-buffers them.
    # (Single-buffering them via pipeline_mode=pl.Buffered(1) would halve this;
    #  kept double-buffered here since it is negligible at this module's P*D.)
    resident = 2 * (p_pad * d * proto_bytes) + 2 * (p_pad * 4)
    budget = max(vmem_limit_bytes - resident - (6 << 20), 2 << 20)
    # Per-row bytes: feat f32 x2 bufs, labels int8 x2 bufs, bf16 matmul operand,
    # ~5 f32 (TN, P_pad) intermediates (logits / exp / mask / temporaries).
    per_row = 2 * d * 4 + 2 * p_pad * 1 + d * 2 + 5 * p_pad * 4
    tn = budget // per_row
    tn = int(max(32, min(tn, 1024)))
    tn -= tn % 32
    # Keep at least 2 tiles when N allows it so the "parallel" grid axis can
    # occupy both v7x TensorCores (no-op on single-TC v5e/v6e).
    if n > 32:
        tn = min(tn, _round_up(int(pl.cdiv(n, 2)), 32))
    num_tiles = int(pl.cdiv(n, tn))
    # Re-balance so the last tile is not mostly padding.
    tn = min(tn, _round_up(int(pl.cdiv(n, num_tiles)), 32))
    num_tiles = int(pl.cdiv(n, tn))
    return tn, num_tiles


def _mrc_loss_kernel(feat_ref, proto_ref, labels_ref, weights_ref, partial_ref,
                     *, inv_temperature, is_stable, matmul_in_bf16, num_valid):
    feat = feat_ref[...]                                       # (TN, D) f32
    # L2-normalize rows (F.normalize, eps=1e-12); fold 1/temperature into the
    # per-row scale so no (TN, P_pad)-wide divide is needed on the logits.
    sq = jnp.sum(feat * feat, axis=1, keepdims=True)           # (TN, 1)
    inv_norm = 1.0 / jnp.maximum(jnp.sqrt(sq), 1e-12)
    feat = feat * (inv_norm * inv_temperature)

    proto = proto_ref[...]                                     # (P_pad, D) bf16/f32
    feat_mm = feat.astype(jnp.bfloat16) if matmul_in_bf16 else feat

    # (TN, D) . (P_pad, D) contracted over D -> (TN, P_pad); straight to the
    # MXU with f32 accumulation, no in-kernel transpose of the prototype tile.
    logits = lax.dot_general(feat_mm, proto,
                             dimension_numbers=(((1,), (1,)), ((), ())),
                             preferred_element_type=jnp.float32)

    p_pad = logits.shape[-1]
    if num_valid < p_pad:
        # Column validity from the static prototype count (no `valid` input
        # stream): padded columns get a huge-negative logit so exp() underflows
        # to exactly 0 and mask (=0 there) keeps every other term at 0.
        col_valid = lax.broadcasted_iota(jnp.int32, (1, p_pad), 1) < num_valid
        logits = jnp.where(col_valid, logits, -1e30)

    if is_stable:
        # Per-row max over real prototype columns only (padded cols are -1e30).
        logits = logits - jnp.max(logits, axis=1, keepdims=True)

    # Labels streamed as int8; cast to f32 here when forming the mask.
    mask = labels_ref[...].astype(jnp.float32) * weights_ref[...]   # (TN, P_pad)
    exp_logits = jnp.exp(logits) * (1.0 - mask)
    denom = jnp.sum(exp_logits, axis=1, keepdims=True)              # (TN, 1)

    # Fused epilogue: sum(mask * (logits - log(denom)))
    #   = sum(mask * logits) - sum(mask) * log(denom)     (per row)
    # avoids materializing the (TN, P_pad) log_prob temp.  Padded rows have
    # mask == 0 everywhere -> contribute exactly 0.
    row_pos = jnp.sum(mask * logits, axis=1, keepdims=True)
    row_cnt = jnp.sum(mask, axis=1, keepdims=True)
    tile_sum = jnp.sum(row_pos - row_cnt * jnp.log(denom))

    # Lane-dense (8,128) slab -> single unmasked vector store per tile.
    partial_ref[...] = jnp.broadcast_to(tile_sum, partial_ref.shape)


def mrc_loss(backbone_features, prototype_features, prototype_labels,
             prototype_weights, *, temperature=0.1, base_temperature=1.0,
             lambda_prototype=1.0, is_stable=True, matmul_in_bf16=True):
    feat = jnp.asarray(backbone_features, jnp.float32)
    n, d = feat.shape
    proto = jnp.asarray(prototype_features, jnp.float32)
    p = proto.shape[0]

    # Labels are {0,1}: stream them as int8 (dominant per-sample input stream).
    labels = jnp.asarray(prototype_labels)[:, :p].astype(jnp.int8)            # (N, P)
    weights = jnp.asarray(prototype_weights, jnp.float32).reshape(1, -1)[:, :p]

    # ---- pad P lane-dense: multiple of 256 when it can fill the 256-wide
    # v6e/v7x MXU output tile, 128 otherwise ---------------------------------
    p_pad = _round_up(p, 256 if p >= 256 else 128)
    proto = jnp.pad(proto, ((0, p_pad - p), (0, 0)))
    labels = jnp.pad(labels, ((0, 0), (0, p_pad - p)))
    weights = jnp.pad(weights, ((0, 0), (0, p_pad - p)))

    # bf16 MXU operands (f32 accumulation): cast the resident prototype block
    # once here, not per grid step, halving its VMEM/HBM footprint.
    if matmul_in_bf16:
        proto = proto.astype(jnp.bfloat16)
    proto_bytes = 2 if matmul_in_bf16 else 4

    # ---- generation-aware VMEM budget & N tiling ----------------------------
    vmem_limit = (_vmem_capacity_bytes() * 7) // 8      # 112 MiB v5e/v6e, 56 MiB v7x
    tn, num_tiles = _choose_tile_n(n, d, p_pad, proto_bytes, vmem_limit)
    n_pad = tn * num_tiles
    feat = jnp.pad(feat, ((0, n_pad - n), (0, 0)))
    labels = jnp.pad(labels, ((0, n_pad - n), (0, 0)))

    kernel = functools.partial(
        _mrc_loss_kernel,
        inv_temperature=1.0 / float(temperature),
        is_stable=bool(is_stable),
        matmul_in_bf16=bool(matmul_in_bf16),
        num_valid=int(p),
    )

    # TODO(synk): for very large P*D the resident prototype block should also be
    # tiled (second 'arbitrary' grid axis with running max / log-sum-exp
    # accumulators); not needed at this module's prototype counts (P == num_class).
    partials = pl.pallas_call(
        kernel,
        out_shape=jax.ShapeDtypeStruct((num_tiles, 8, 128), jnp.float32),
        grid_spec=pltpu.PrefetchScalarGridSpec(
            num_scalar_prefetch=0,
            grid=(num_tiles,),
            in_specs=[
                pl.BlockSpec((tn, d), lambda i: (i, 0)),      # features (streamed, f32)
                pl.BlockSpec((p_pad, d), lambda i: (0, 0)),   # prototypes (resident)
                pl.BlockSpec((tn, p_pad), lambda i: (i, 0)),  # labels (streamed, int8)
                pl.BlockSpec((1, p_pad), lambda i: (0, 0)),   # weights (resident)
            ],
            out_specs=pl.BlockSpec((1, 8, 128), lambda i: (i, 0, 0)),
        ),
        compiler_params=pltpu.CompilerParams(
            dimension_semantics=("parallel",),   # no cross-tile state -> shardable
            vmem_limit_bytes=int(vmem_limit)),
    )(feat, proto, labels, weights)

    scale = -(float(temperature) / float(base_temperature)) * \
        float(lambda_prototype) / n
    return scale * jnp.sum(partials[:, 0, 0])


def _mrc_loss_ref(backbone_features, prototype_features, prototype_labels,
                  prototype_weights, *, temperature=0.1, base_temperature=1.0,
                  lambda_prototype=1.0, is_stable=True):
    """Pure-JAX reference mirroring the PyTorch forward."""
    f = backbone_features.astype(jnp.float32)
    f = f / jnp.maximum(jnp.linalg.norm(f, axis=1, keepdims=True), 1e-12)
    p = prototype_features.astype(jnp.float32)
    logits = (f @ p.T) / temperature
    if is_stable:
        logits = logits - jnp.max(logits, axis=1, keepdims=True)
    mask = prototype_labels[:, :p.shape[0]].astype(jnp.float32) * \
        prototype_weights.astype(jnp.float32)[None, :]
    exp_logits = jnp.exp(logits) * (1.0 - mask)
    log_prob = logits - jnp.log(jnp.sum(exp_logits, axis=1, keepdims=True))
    per_sample = -(temperature / base_temperature) * jnp.sum(mask * log_prob, axis=1)
    return lambda_prototype * jnp.sum(per_sample) / f.shape[0]


if __name__ == "__main__":
    key = jax.random.PRNGKey(0)
    k1, k2, k3, k4 = jax.random.split(key, 4)

    # Shapes implied by the module defaults: outputs (batch=2, seq=4, num_class=12)
    # -> N = 8 flattened samples; backbone feature dim D = 32; P = num_class.
    batch, seq, num_class = 2, 4, 12
    N, D, P = batch * seq, 32, num_class

    outputs = jax.random.normal(k1, (batch, seq, num_class), jnp.float32)  # only shape (N) used
    backbone_features = jax.random.normal(k2, (N, D), jnp.float32)
    prototype_features = jax.random.normal(k3, (P, D), jnp.float32)
    prototype_labels = (jax.random.uniform(k4, (N, P)) > 0.5).astype(jnp.float32)
    prototype_weights = jnp.ones((num_class,), jnp.float32)  # default __init__ behavior

    ref = _mrc_loss_ref(backbone_features, prototype_features, prototype_labels,
                        prototype_weights, temperature=0.1, base_temperature=1.0,
                        lambda_prototype=1.0, is_stable=True)

    # f32-MXU path: tight numerical check against the pure-JAX reference.
    loss_f32 = mrc_loss(backbone_features, prototype_features, prototype_labels,
                        prototype_weights, temperature=0.1, base_temperature=1.0,
                        lambda_prototype=1.0, is_stable=True, matmul_in_bf16=False)
    loss_f32 = jax.block_until_ready(loss_f32)
    np.testing.assert_allclose(np.asarray(loss_f32), np.asarray(ref),
                               rtol=1e-4, atol=1e-4)

    # Default path (bf16 MXU operands, f32 accumulation): looser tolerance.
    loss_bf16 = jax.block_until_ready(
        mrc_loss(backbone_features, prototype_features, prototype_labels,
                 prototype_weights, temperature=0.1, base_temperature=1.0,
                 lambda_prototype=1.0, is_stable=True))
    np.testing.assert_allclose(np.asarray(loss_bf16), np.asarray(ref),
                               rtol=5e-2, atol=1.0)

    print("KERNEL_OK")
</pallas_src>

<mosaic_0001>
module attributes {stable_mosaic.version = 11 : i64} {
  func.func @_mrc_loss_kernel(%arg0: i32, %arg1: memref<32x32xf32, #tpu.memory_space<vmem>>, %arg2: memref<128x32xf32, #tpu.memory_space<vmem>>, %arg3: memref<32x128xi8, #tpu.memory_space<vmem>>, %arg4: memref<1x128xf32, #tpu.memory_space<vmem>>, %arg5: memref<1x8x128xf32, #tpu.memory_space<vmem>>) attributes {dimension_semantics = [#tpu.dimension_semantics<parallel>], iteration_bounds = array<i64: 1>, scalar_prefetch = 0 : i64, scratch_operands = 0 : i64, tpu.core_type = #tpu.core_type<tc>, window_params = [{transform_indices = @transform_0, window_bounds = array<i64: 32, 32>}, {pipeline_mode = #tpu.pipeline_mode<synchronous>, transform_indices = @transform_1, window_bounds = array<i64: 128, 32>}, {transform_indices = @transform_2, window_bounds = array<i64: 32, 128>}, {pipeline_mode = #tpu.pipeline_mode<synchronous>, transform_indices = @transform_3, window_bounds = array<i64: 1, 128>}, {transform_indices = @transform_4, window_bounds = array<i64: 1, 8, 128>}]} {
    %c0 = arith.constant 0 : index
    %c0_0 = arith.constant 0 : index
    %0 = vector.load %arg1[%c0, %c0_0] : memref<32x32xf32, #tpu.memory_space<vmem>>, vector<32x32xf32>
    %1 = arith.mulf %0, %0 : vector<32x32xf32>
    %cst = arith.constant dense<0.000000e+00> : vector<32xf32>
    %2 = vector.multi_reduction <add>, %1, %cst [1] : vector<32x32xf32> to vector<32xf32>
    %3 = vector.shape_cast %2 : vector<32xf32> to vector<32x1xf32>
    %4 = math.sqrt %3 : vector<32x1xf32>
    %cst_1 = arith.constant 9.99999996E-13 : f32
    %5 = vector.broadcast %cst_1 : f32 to vector<32x1xf32>
    %6 = arith.maximumf %4, %5 : vector<32x1xf32>
    %cst_2 = arith.constant 1.000000e+00 : f32
    %7 = vector.broadcast %cst_2 : f32 to vector<32x1xf32>
    %8 = arith.divf %7, %6 : vector<32x1xf32>
    %cst_3 = arith.constant 1.000000e+01 : f32
    %9 = vector.broadcast %cst_3 : f32 to vector<32x1xf32>
    %10 = arith.mulf %8, %9 : vector<32x1xf32>
    %11 = vector.broadcast %10 : vector<32x1xf32> to vector<32x32xf32>
    %12 = arith.mulf %0, %11 : vector<32x32xf32>
    %c0_4 = arith.constant 0 : index
    %c0_5 = arith.constant 0 : index
    %13 = vector.load %arg2[%c0_4, %c0_5] : memref<128x32xf32, #tpu.memory_space<vmem>>, vector<128x32xf32>
    %cst_6 = arith.constant dense<0.000000e+00> : vector<32x128xf32>
    %14 = tpu.matmul %12, %13, %cst_6 {dimension_numbers = #tpu.dot_dimension_numbers<[1], [1], [0], [0], [0, 0, 1, 0], [], []>} : vector<32x32xf32>, vector<128x32xf32>, vector<32x128xf32> -> vector<32x128xf32>
    %15 = tpu.iota {dimensions = array<i32: 1>} : vector<1x128xi32>
    %c12_i32 = arith.constant 12 : i32
    %16 = vector.broadcast %c12_i32 : i32 to vector<1x128xi32>
    %17 = arith.cmpi slt, %15, %16 : vector<1x128xi32>
    %cst_7 = arith.constant -1.000000e+30 : f32
    %18 = vector.shape_cast %17 : vector<1x128xi1> to vector<1x128xi1>
    %19 = vector.broadcast %18 : vector<1x128xi1> to vector<32x128xi1>
    %20 = vector.broadcast %cst_7 : f32 to vector<32x128xf32>
    %21 = arith.select %19, %14, %20 : vector<32x128xi1>, vector<32x128xf32>
    %cst_8 = arith.constant dense<0xFF800000> : vector<32xf32>
    %22 = vector.multi_reduction <maximumf>, %21, %cst_8 [1] : vector<32x128xf32> to vector<32xf32>
    %23 = vector.shape_cast %22 : vector<32xf32> to vector<32x1xf32>
    %24 = vector.broadcast %23 : vector<32x1xf32> to vector<32x128xf32>
    %25 = arith.subf %21, %24 : vector<32x128xf32>
    %c0_9 = arith.constant 0 : index
    %c0_10 = arith.constant 0 : index
    %26 = vector.load %arg3[%c0_9, %c0_10] : memref<32x128xi8, #tpu.memory_space<vmem>>, vector<32x128xi8>
    %27 = arith.sitofp %26 : vector<32x128xi8> to vector<32x128xf32>
    %c0_11 = arith.constant 0 : index
    %c0_12 = arith.constant 0 : index
    %28 = vector.load %arg4[%c0_11, %c0_12] : memref<1x128xf32, #tpu.memory_space<vmem>>, vector<1x128xf32>
    %29 = vector.broadcast %28 : vector<1x128xf32> to vector<32x128xf32>
    %30 = arith.mulf %27, %29 : vector<32x128xf32>
    %31 = math.exp %25 : vector<32x128xf32>
    %cst_13 = arith.constant 1.000000e+00 : f32
    %32 = vector.broadcast %cst_13 : f32 to vector<32x128xf32>
    %33 = arith.subf %32, %30 : vector<32x128xf32>
    %34 = arith.mulf %31, %33 : vector<32x128xf32>
    %cst_14 = arith.constant dense<0.000000e+00> : vector<32xf32>
    %35 = vector.multi_reduction <add>, %34, %cst_14 [1] : vector<32x128xf32> to vector<32xf32>
    %36 = vector.shape_cast %35 : vector<32xf32> to vector<32x1xf32>
    %37 = arith.mulf %30, %25 : vector<32x128xf32>
    %cst_15 = arith.constant dense<0.000000e+00> : vector<32xf32>
    %38 = vector.multi_reduction <add>, %37, %cst_15 [1] : vector<32x128xf32> to vector<32xf32>
    %39 = vector.shape_cast %38 : vector<32xf32> to vector<32x1xf32>
    %cst_16 = arith.constant dense<0.000000e+00> : vector<32xf32>
    %40 = vector.multi_reduction <add>, %30, %cst_16 [1] : vector<32x128xf32> to vector<32xf32>
    %41 = vector.shape_cast %40 : vector<32xf32> to vector<32x1xf32>
    %42 = math.log %36 : vector<32x1xf32>
    %43 = arith.mulf %41, %42 : vector<32x1xf32>
    %44 = arith.subf %39, %43 : vector<32x1xf32>
    %45 = vector.shape_cast %44 : vector<32x1xf32> to vector<1x32x1xf32>
    %cst_17 = arith.constant dense<0.000000e+00> : vector<1xf32>
    %46 = vector.multi_reduction <add>, %45, %cst_17 [1, 2] : vector<1x32x1xf32> to vector<1xf32>
    %47 = vector.shape_cast %46 : vector<1xf32> to vector<1x1x1xf32>
    %48 = vector.extract %47[0, 0, 0] : f32 from vector<1x1x1xf32>
    %49 = vector.broadcast %48 : f32 to vector<1x8x128xf32>
    %c0_18 = arith.constant 0 : index
    %c0_19 = arith.constant 0 : index
    %c0_20 = arith.constant 0 : index
    %50 = vector.load %arg5[%c0_18, %c0_19, %c0_20] : memref<1x8x128xf32, #tpu.memory_space<vmem>>, vector<1x8x128xf32>
    tpu.vector_store %arg5[%c0_18, %c0_19, %c0_20], %49 {strides = array<i32>} : memref<1x8x128xf32, #tpu.memory_space<vmem>>, vector<1x8x128xf32>,
    return
  }
  func.func @transform_0(%arg0: i32) -> (i32, i32) {
    %c0_i32 = arith.constant 0 : i32
    %c0_i32_0 = arith.constant 0 : i32
    return %arg0, %c0_i32 : i32, i32
  }
  func.func @transform_1(%arg0: i32) -> (i32, i32) {
    %c0_i32 = arith.constant 0 : i32
    %c0_i32_0 = arith.constant 0 : i32
    %c0_i32_1 = arith.constant 0 : i32
    return %c0_i32, %c0_i32_0 : i32, i32
  }
  func.func @transform_2(%arg0: i32) -> (i32, i32) {
    %c0_i32 = arith.constant 0 : i32
    %c0_i32_0 = arith.constant 0 : i32
    return %arg0, %c0_i32 : i32, i32
  }
  func.func @transform_3(%arg0: i32) -> (i32, i32) {
    %c0_i32 = arith.constant 0 : i32
    %c0_i32_0 = arith.constant 0 : i32
    %c0_i32_1 = arith.constant 0 : i32
    return %c0_i32, %c0_i32_0 : i32, i32
  }
  func.func @transform_4(%arg0: i32) -> (i32, i32, i32) {
    %c0_i32 = arith.constant 0 : i32
    %c0_i32_0 = arith.constant 0 : i32
    %c0_i32_1 = arith.constant 0 : i32
    return %arg0, %c0_i32, %c0_i32_0 : i32, i32, i32
  }
}

</mosaic_0001>

<bundles_post_ra>
// kernel: tpu_custom_call.1
= control target key start
LH: loop header
LB: loop body
LE: loop exit
PB: predicated region body
PF: predicated region fallthrough
CT: control target
= control target key end

     0   :  { %vm26_vm0 = vcmask 261120   ;;  %s790_s0 = inlined_call_operand.vmem [shape: f32[32,32], index: 0, kind: input, shape index: {}]   ;;  %s791_s1 = inlined_call_operand.vmem [shape: f32[128,32], index: 1, kind: input, shape index: {}]   ;;  %s792_s2 = inlined_call_operand.vmem [shape: s8[32,128], index: 2, kind: input, shape index: {}]   ;;  %s793_s3 = inlined_call_operand.vmem [shape: f32[1,128], index: 3, kind: input, shape index: {}]   ;;  %s794_s4 = inlined_call_operand.hbm [shape: f32[1,8,128], index: 4, kind: output, shape index: {}]  }
   0x1   :  { %v613_v0 = vld [vmem:[%s790_s0 + $0x10] sm:$0xff]  ;;  %v618_v1 = vld [vmem:[%s790_s0] sm:$0xff]  ;;  %v623_v2 = vld [vmem:[%s790_s0 + $0x18] sm:$0xff] }
   0x2   :  { %v24_v3 = vmul.f32 %v613_v0, %v613_v0  ;;  %vm629_vm1 = vmpackc.low %vm26_vm0, %vm26_vm0  ;;  %v22_v5 = vmul.f32 %v618_v1, %v618_v1  ;;  %v25_v6 = vmul.f32 %v623_v2, %v623_v2  ;;  %v640_v7 = vld [vmem:[%s790_s0 + $0x8] sm:$0xff]  ;;  %v87_v8 = vld [vmem:[%s791_s1] sm:$0xff] }
   0x3   :  { %v23_v9 = vmul.f32 %v640_v7, %v640_v7  ;;  %v88_v10 = vld [vmem:[%s791_s1 + $0x8] sm:$0xff]  ;;  %v89_v11 = vld [vmem:[%s791_s1 + $0x10] sm:$0xff]  ;;  %v90_v12 = vld [vmem:[%s791_s1 + $0x18] sm:$0xff] }
   0x4   :  { %v33_v13 = vsel %vm26_vm0, %v24_v3, 0.0  ;;  %v27_v14 = vsel %vm26_vm0, %v22_v5, 0.0  ;;  %v461_v15 = vpack.c.bf16 %v88_v10, %v87_v8  ;;  %v467_v16 = vpack.c.bf16 %v90_v12, %v89_v11 }
   0x5   :  { %34 = vadd.xlane.f32.xlu1 %v33_v13  ;;  %28 = vadd.xlane.f32.xlu0 %v27_v14 }
   0x6   :  { %9 = vsyncpa [#allocation3], 0  ;;  %v36_v17 = vsel %vm26_vm0, %v25_v6, 0.0  ;;  %v30_v18 = vsel %vm26_vm0, %v23_v9, 0.0  ;;  %463 = vmatprep.subr.msk.bf16.mxu0 %vm629_vm1, %v461_v15  ;;  %509 = vmatprep.subr.msk.bf16.mxu1 %vm629_vm1, %v461_v15  ;;  %v91_v19 = vld [vmem:[%s791_s1 + $0x20] sm:$0xff]  ;;  %v92_v20 = vld [vmem:[%s791_s1 + $0x28] sm:$0xff] }
   0x7   :  { %466 = vmatpush3.bf16.xpose.msk.msra.mxu0 %vm629_vm1, %v461_v15  ;;  %517 = vmatpush3.bf16.xpose.msk.msra.mxu1 %vm629_vm1, %v461_v15  ;;  %v473_v21 = vpack.c.bf16 %v92_v20, %v91_v19  ;;  %v93_v22 = vld [vmem:[%s791_s1 + $0x30] sm:$0xff]  ;;  %v94_v23 = vld [vmem:[%s791_s1 + $0x38] sm:$0xff]  ;;  %v95_v25 = vld [vmem:[%s791_s1 + $0x40] sm:$0xff]  ;;  %vm349_vm11 = vcmask 7168  }
   0x8   :  { %469 = vmatprep.subr.msk.bf16.mxu0 %vm629_vm1, %v467_v16  ;;  %510 = vmatprep.subr.msk.bf16.mxu1 %vm629_vm1, %v467_v16  ;;  %v479_v24 = vpack.c.bf16 %v94_v23, %v93_v22  ;;  %v96_v26 = vld [vmem:[%s791_s1 + $0x48] sm:$0xff]  ;;  %v97_v28 = vld [vmem:[%s791_s1 + $0x50] sm:$0xff]  ;;  %v98_v29 = vld [vmem:[%s791_s1 + $0x58] sm:$0xff] }
   0x9   :  { %37 = vadd.xlane.f32.xlu1 %v36_v17  ;;  %31 = vadd.xlane.f32.xlu0 %v30_v18  ;;  %v485_v27 = vpack.c.bf16 %v96_v26, %v95_v25  ;;  %v491_v30 = vpack.c.bf16 %v98_v29, %v97_v28  ;;  %v99_v31 = vld [vmem:[%s791_s1 + $0x60] sm:$0xff]  ;;  %v100_v32 = vld [vmem:[%s791_s1 + $0x68] sm:$0xff]  ;;  %v101_v34 = vld [vmem:[%s791_s1 + $0x70] sm:$0xff]  ;;  %v248_v17 = vlaneseq }
   0xa   :  { %v497_v33 = vpack.c.bf16 %v100_v32, %v99_v31  ;;  %v102_v35 = vld [vmem:[%s791_s1 + $0x78] sm:$0xff] }
   0xb   :  { %v503_v36 = vpack.c.bf16 %v102_v35, %v101_v34 }
   0xf   :  { %472 = vmatpush3.bf16.xpose.msk.msra.mxu0 %vm629_vm1, %v467_v16  ;;  %518 = vmatpush3.bf16.xpose.msk.msra.mxu1 %vm629_vm1, %v467_v16 }
  0x10   :  { %475 = vmatprep.subr.msk.bf16.mxu0 %vm629_vm1, %v473_v21  ;;  %511 = vmatprep.subr.msk.bf16.mxu1 %vm629_vm1, %v473_v21 }
  0x17   :  { %478 = vmatpush3.bf16.xpose.msk.msra.mxu0 %vm629_vm1, %v473_v21  ;;  %519 = vmatpush3.bf16.xpose.msk.msra.mxu1 %vm629_vm1, %v473_v21 }
  0x18   :  { %481 = vmatprep.subr.msk.bf16.mxu0 %vm629_vm1, %v479_v24  ;;  %512 = vmatprep.subr.msk.bf16.mxu1 %vm629_vm1, %v479_v24 }
  0x1f   :  { %484 = vmatpush3.bf16.xpose.msk.msra.mxu0 %vm629_vm1, %v479_v24  ;;  %520 = vmatpush3.bf16.xpose.msk.msra.mxu1 %vm629_vm1, %v479_v24 }
  0x20   :  { %487 = vmatprep.subr.msk.bf16.mxu0 %vm629_vm1, %v485_v27  ;;  %513 = vmatprep.subr.msk.bf16.mxu1 %vm629_vm1, %v485_v27 }
  0x27   :  { %490 = vmatpush3.bf16.xpose.msk.msra.mxu0 %vm629_vm1, %v485_v27  ;;  %521 = vmatpush3.bf16.xpose.msk.msra.mxu1 %vm629_vm1, %v485_v27 }
  0x28   :  { %493 = vmatprep.subr.msk.bf16.mxu0 %vm629_vm1, %v491_v30  ;;  %514 = vmatprep.subr.msk.bf16.mxu1 %vm629_vm1, %v491_v30 }
  0x2f   :  { %496 = vmatpush3.bf16.xpose.msk.msra.mxu0 %vm629_vm1, %v491_v30  ;;  %522 = vmatpush3.bf16.xpose.msk.msra.mxu1 %vm629_vm1, %v491_v30 }
  0x30   :  { %499 = vmatprep.subr.msk.bf16.mxu0 %vm629_vm1, %v497_v33  ;;  %515 = vmatprep.subr.msk.bf16.mxu1 %vm629_vm1, %v497_v33 }
  0x37   :  { %502 = vmatpush3.bf16.xpose.msk.msra.mxu0 %vm629_vm1, %v497_v33  ;;  %523 = vmatpush3.bf16.xpose.msk.msra.mxu1 %vm629_vm1, %v497_v33 }
  0x38   :  { %505 = vmatprep.subr.msk.bf16.mxu0 %vm629_vm1, %v503_v36  ;;  %516 = vmatprep.subr.msk.bf16.mxu1 %vm629_vm1, %v503_v36 }
  0x3f   :  { %508 = vmatpush3.bf16.xpose.msk.msra.mxu0 %vm629_vm1, %v503_v36  ;;  %524 = vmatpush3.bf16.xpose.msk.msra.mxu1 %vm629_vm1, %v503_v36 }
  0x92   :  { %v35_v37 = vpop.xlane.xlu1 %34  ;;  %v29_v38 = vpop.xlane.xlu0 %28 }
  0x93   :  { %528 = vrsqrt.f32 %v35_v37  ;;  %vm55_vm2 = vcmp.eq.f32.partialorder %v35_v37, inf  ;;  %v58_v45 = vand.u32 2147483648, %v35_v37  ;;  %vm41_vm3 = vcmp.eq.f32.partialorder %v29_v38, inf }
  0x94   :  { %530 = vrsqrt.f32 %v29_v38  ;;  %v44_v46 = vand.u32 2147483648, %v29_v38  ;;  %vm57_vm4 = vcmp.eq.f32.partialorder %v35_v37, 0.0  ;;  %vm43_vm5 = vcmp.eq.f32.partialorder %v29_v38, 0.0 }
  0x96   :  { %v38_v39 = vpop.xlane.xlu1 %37  ;;  %v32_v40 = vpop.xlane.xlu0 %31 }
  0x97   :  { %532 = vrsqrt.f32 %v38_v39  ;;  %vm62_vm6 = vcmp.eq.f32.partialorder %v38_v39, inf  ;;  %vm64_vm7 = vcmp.eq.f32.partialorder %v38_v39, 0.0  ;;  %v65_v55 = vand.u32 2147483648, %v38_v39 }
  0x98   :  { %534 = vrsqrt.f32 %v32_v40  ;;  %vm48_vm8 = vcmp.eq.f32.partialorder %v32_v40, inf  ;;  %v51_v59 = vand.u32 2147483648, %v32_v40  ;;  %vm50_vm9 = vcmp.eq.f32.partialorder %v32_v40, 0.0 }
  0x9d   :  { %v529_v41 = vpop.eup %528 }
  0x9e   :  { %v531_v42 = vpop.eup %530  ;;  %v54_v43 = vmul.f32 %v529_v41, %v35_v37 }
  0x9f   :  { %v40_v44 = vmul.f32 %v531_v42, %v29_v38 }
  0xa0   :  { %v56_v47 = vsel %vm55_vm2, %v35_v37, %v54_v43 }
  0xa1   :  { %v533_v48 = vpop.eup %532  ;;  %v42_v49 = vsel %vm41_vm3, %v29_v38, %v40_v44  ;;  %v59_v50 = vsel %vm57_vm4, %v58_v45, %v56_v47 }
  0xa2   :  { %v535_v51 = vpop.eup %534  ;;  %v61_v52 = vmul.f32 %v533_v48, %v38_v39  ;;  %v45_v53 = vsel %vm43_vm5, %v44_v46, %v42_v49  ;;  %v69_v54 = vmax.f32 %v59_v50, 1e-12 }
  0xa3   :  { %v47_v56 = vmul.f32 %v535_v51, %v32_v40  ;;  %v67_v57 = vmax.f32 %v45_v53, 1e-12 }
  0xa4   :  { %v63_v58 = vsel %vm62_vm6, %v38_v39, %v61_v52  ;;  %536 = vrcp.f32 %v69_v54  ;;  %v402_v39 = vld [vmem:[%s793_s3] ss:$0 sm:$0xff] }
  0xa5   :  { %v49_v60 = vsel %vm48_vm8, %v32_v40, %v47_v56  ;;  %538 = vrcp.f32 %v67_v57  ;;  %v66_v61 = vsel %vm64_vm7, %v65_v55, %v63_v58 }
  0xa6   :  { %v52_v62 = vsel %vm50_vm9, %v51_v59, %v49_v60  ;;  %v70_v63 = vmax.f32 %v66_v61, 1e-12 }
  0xa7   :  { %v68_v3 = vmax.f32 %v52_v62, 1e-12 }
  0xa8   :  { %540 = vrcp.f32 %v70_v63 }
  0xa9   :  { %542 = vrcp.f32 %v68_v3 }
  0xae   :  { %v537_v4 = vpop.eup %536 }
  0xaf   :  { %v539_v5 = vpop.eup %538  ;;  %v81_v6 = vmul.f32 10.0, %v537_v4 }
  0xb0   :  { %v79_v8 = vmul.f32 10.0, %v539_v5 }
  0xb1   :  { %v85_v9 = vmul.f32 %v81_v6, %v613_v0  ;;  %v249_v0 = vand.u32 127, %v248_v17 }
  0xb2   :  { %v541_v10 = vpop.eup %540  ;;  %v83_v11 = vmul.f32 %v79_v8, %v618_v1 }
  0xb3   :  { %v543_v12 = vpop.eup %542  ;;  %458 = vmatprep.mubr.msk.f32.mxu1 %vm26_vm0, %v85_v9  ;;  %v82_v13 = vmul.f32 10.0, %v541_v10  ;;  %vm250_vm10 = vcmp.lt.s32.totalorder %v249_v0, 12 }
  0xb4   :  { %455 = vmatprep.mubr.msk.f32.mxu0 %vm26_vm0, %v83_v11  ;;  %v80_v14 = vmul.f32 10.0, %v543_v12 }
  0xb5   :  { %v86_v15 = vmul.f32 %v82_v13, %v623_v2 }
  0xb6   :  { %v84_v16 = vmul.f32 %v80_v14, %v640_v7  ;;  %v269_v7 = vld [vmem:[%s792_s2] sm:$0xff]  ;;  %s584_s2 = smov [#allocation2]  }
  0xb7   :  { %459 = vmatmul.mubr.msk.f32.vlgmr.msra.gmra.mrb[0].mxu1 %vm26_vm0, %v86_v15  ;;  %v271_v28 = vunpack.c.1.s8 %v269_v7  ;;  %v270_v30 = vunpack.c.0.s8 %v269_v7  ;;  %v273_v37 = vunpack.c.3.s8 %v269_v7  ;;  %v272_v41 = vunpack.c.2.s8 %v269_v7  ;;  %s374_s3 = sshll.u32 %s584_s2, 4  ;;  %s375_s3 = int_to_ptr.vmem [resolvable:$true] %s374_s3 }
  0xb8   :  { %456 = vmatmul.mubr.msk.f32.vlgmr.msra.gmra.mrb[0].mxu0 %vm26_vm0, %v84_v16  ;;  %s560_s5 = scalar_lea.vmem %s375_s3, 128  ;;  %p565_p1 = scmp.lt.s32.totalorder %s375_s3, %s375_s3 }
  0xb9   :  { %v275_v36 = vcvt.s32.f32 %v271_v28  ;;  %v274_v40 = vcvt.s32.f32 %v270_v30  ;;  %v277_v44 = vcvt.s32.f32 %v273_v37  ;;  %v276_v46 = vcvt.s32.f32 %v272_v41  ;;  %p561_p0 = scmp.ne.s32.totalorder %s375_s3, %s560_s5  ;;  %p566_p2 = scmp.lt.s32.totalorder %s560_s5, %s560_s5 }
  0xbb   :  { %v286_v43 = vmul.f32 %v402_v39, %v275_v36  ;;  %v285_v45 = vmul.f32 %v402_v39, %v274_v40  ;;  %v288_v49 = vmul.f32 %v402_v39, %v277_v44  ;;  %v287_v51 = vmul.f32 %v402_v39, %v276_v46  ;;  %p567_p3 = por %p566_p2, %p565_p1 }
  0xbd   :  { %v298_v47 = vsub.f32 1.0, %v286_v43  ;;  %v297_v48 = vsub.f32 1.0, %v285_v45  ;;  %v300_v54 = vsub.f32 1.0, %v288_v49  ;;  %v299_v56 = vsub.f32 1.0, %v287_v51  ;;  %p568_p4 = pnand %p567_p3, %p561_p0 }
 0x18a   :  { %v460_v18 = vpop.f32.mrb[0].mxu1 }
 0x18b   :  { %v457_v1 = vpop.f32.mrb[0].mxu0  ;;  %v239_v19 = vpop.f32.mrb[1].mxu1  ;;  %v256_v23 = vsel %vm250_vm10, %v460_v18, -1e+30 }
 0x18c   :  { %v229_v20 = vpop.f32.mrb[1].mxu0  ;;  %v254_v21 = vsel %vm250_vm10, %v457_v1, -1e+30  ;;  %v255_v2 = vsel %vm250_vm10, %v239_v19, -1e+30 }
 0x18d   :  { %259 = vmax.xlane.f32.xlu1 %v254_v21  ;;  %v253_v22 = vsel %vm250_vm10, %v229_v20, -1e+30 }
 0x18e   :  { %257 = vmax.xlane.f32.xlu0 %v253_v22 }
 0x191   :  { %263 = vmax.xlane.f32.xlu1 %v256_v23 }
 0x192   :  { %261 = vmax.xlane.f32.xlu0 %v255_v2 }
 0x21a   :  { %v260_v24 = vpop.xlane.xlu1 %259 }
 0x21b   :  { %v266_v25 = vsub.f32 %v254_v21, %v260_v24  ;;  %v258_v26 = vpop.xlane.xlu0 %257 }
 0x21c   :  { %v265_v27 = vsub.f32 %v253_v22, %v258_v26 }
 0x21d   :  { %v291_v29 = vmul.f32 1.442695, %v266_v25  ;;  %v314_v61 = vmul.f32 %v286_v43, %v266_v25 }
 0x21e   :  { %v289_v31 = vmul.f32 1.442695, %v265_v27  ;;  %v264_v32 = vpop.xlane.xlu1 %263  ;;  %v313_v62 = vmul.f32 %v285_v45, %v265_v27 }
 0x21f   :  { %544 = vpow2.f32 %v291_v29  ;;  %v268_v33 = vsub.f32 %v256_v23, %v264_v32  ;;  %v262_v34 = vpop.xlane.xlu0 %261 }
 0x220   :  { %546 = vpow2.f32 %v289_v31  ;;  %v267_v35 = vsub.f32 %v255_v2, %v262_v34 }
 0x221   :  { %v295_v38 = vmul.f32 1.442695, %v268_v33  ;;  %v316_v3 = vmul.f32 %v288_v49, %v268_v33 }
 0x222   :  { %v293_v42 = vmul.f32 1.442695, %v267_v35  ;;  %v315_v63 = vmul.f32 %v287_v51, %v267_v35 }
 0x223   :  { %548 = vpow2.f32 %v295_v38 }
 0x224   :  { %550 = vpow2.f32 %v293_v42 }
 0x229   :  { %v545_v50 = vpop.eup %544 }
 0x22a   :  { %v547_v52 = vpop.eup %546  ;;  %v302_v53 = vmul.f32 %v545_v50, %v298_v47 }
 0x22b   :  { %v301_v55 = vmul.f32 %v547_v52, %v297_v48 }
 0x22c   :  { %307 = vadd.xlane.f32.xlu1 %v302_v53 }
 0x22d   :  { %v549_v57 = vpop.eup %548  ;;  %305 = vadd.xlane.f32.xlu0 %v301_v55 }
 0x22e   :  { %v551_v58 = vpop.eup %550  ;;  %v304_v59 = vmul.f32 %v549_v57, %v300_v54 }
 0x22f   :  { %v303_v60 = vmul.f32 %v551_v58, %v299_v56 }
 0x230   :  { %311 = vadd.xlane.f32.xlu1 %v304_v59 }
 0x231   :  { %309 = vadd.xlane.f32.xlu0 %v303_v60 }
 0x234   :  { %327 = vadd.xlane.f32.xlu1 %v286_v43 }
 0x235   :  { %325 = vadd.xlane.f32.xlu0 %v285_v45 }
 0x238   :  { %319 = vadd.xlane.f32.xlu1 %v314_v61 }
 0x239   :  { %317 = vadd.xlane.f32.xlu0 %v313_v62 }
 0x23c   :  { %321 = vadd.xlane.f32.xlu1 %v315_v63 }
 0x23d   :  { %329 = vadd.xlane.f32.xlu0 %v287_v51 }
 0x240   :  { %323 = vadd.xlane.f32.xlu1 %v316_v3 }
 0x241   :  { %331 = vadd.xlane.f32.xlu0 %v288_v49 }
 0x2b9   :  { %v308_v4 = vpop.xlane.xlu1 %307 }
 0x2ba   :  { %552 = vlog2.f32 %v308_v4  ;;  %v306_v5 = vpop.xlane.xlu0 %305 }
 0x2bb   :  { %554 = vlog2.f32 %v306_v5 }
 0x2bd   :  { %v312_v6 = vpop.xlane.xlu1 %311 }
 0x2be   :  { %v310_v8 = vpop.xlane.xlu0 %309 }
 0x2bf   :  { %556 = vlog2.f32 %v310_v8 }
 0x2c0   :  { %558 = vlog2.f32 %v312_v6 }
 0x2c1   :  { %v328_v9 = vpop.xlane.xlu1 %327 }
 0x2c2   :  { %v326_v10 = vpop.xlane.xlu0 %325 }
 0x2c4   :  { %v553_v11 = vpop.eup %552 }
 0x2c5   :  { %v555_v12 = vpop.eup %554  ;;  %v336_v13 = vmul.f32 0.6931472, %v553_v11  ;;  %v320_v14 = vpop.xlane.xlu1 %319 }
 0x2c6   :  { %v334_v15 = vmul.f32 0.6931472, %v555_v12  ;;  %v318_v16 = vpop.xlane.xlu0 %317 }
 0x2c7   :  { %v342_v17 = vmul.f32 %v336_v13, %v328_v9 }
 0x2c8   :  { %v341_v0 = vmul.f32 %v334_v15, %v326_v10 }
 0x2c9   :  { %v557_v18 = vpop.eup %556  ;;  %v346_v1 = vsub.f32 %v320_v14, %v342_v17  ;;  %v322_v21 = vpop.xlane.xlu1 %321 }
 0x2ca   :  { %v559_v19 = vpop.eup %558  ;;  %v345_v20 = vsub.f32 %v318_v16, %v341_v0  ;;  %v338_v22 = vmul.f32 0.6931472, %v557_v18  ;;  %v330_v23 = vpop.xlane.xlu0 %329 }
 0x2cb   :  { %v351_v2 = vsel %vm349_vm11, %v346_v1, 0.0  ;;  %v340_v25 = vmul.f32 0.6931472, %v559_v19 }
 0x2cc   :  { %v350_v7 = vsel %vm349_vm11, %v345_v20, 0.0  ;;  %v343_v24 = vmul.f32 %v338_v22, %v330_v23 }
 0x2cd   :  { %v352_v28 = vadd.f32 %v351_v2, %v350_v7  ;;  %v324_v30 = vpop.xlane.xlu1 %323 }
 0x2ce   :  { %v347_v26 = vsub.f32 %v322_v21, %v343_v24  ;;  %v332_v27 = vpop.xlane.xlu0 %331 }
 0x2cf   :  { %v344_v29 = vmul.f32 %v340_v25, %v332_v27 }
 0x2d0   :  { %v353_v31 = vsel %vm349_vm11, %v347_v26, 0.0 }
 0x2d1   :  { %v348_v32 = vsub.f32 %v324_v30, %v344_v29  ;;  %v354_v33 = vadd.f32 %v353_v31, %v352_v28 }
 0x2d3   :  { %v355_v34 = vsel %vm349_vm11, %v348_v32, 0.0 }
 0x2d4   :  { %v356_v35 = vadd.f32 %v355_v34, %v354_v33 }
 0x2d6   :  { %357 = vadd.xlane.f32.xlu0 %v356_v35 }
 0x363   :  { %v358_v36 = vpop.xlane.xlu0 %357 }
 0x364   :  { %v359_v37 = vrot.slane %v358_v36, 4 }
 0x366   :  { %v360_v38 = vadd.f32 %v359_v37, %v358_v36 }
 0x368   :  { %v361_v39 = vrot.slane %v360_v38, 2 }
 0x36a   :  { %v362_v40 = vadd.f32 %v361_v39, %v360_v38 }
 0x36c   :  { %v363_v41 = vrot.slane %v362_v40, 1 }
 0x36e   :  { %v364_v42 = vadd.f32 %v363_v41, %v362_v40 }
 0x370   :  { %525 = vpush %v364_v42 }
 0x3a1   :  { %s526_s0 = spop %525 }
 0x3a2   :  { %v366_v43 = vstv %s526_s0 }
 0x3a3   :  { %367 = vst [vmem:[#allocation2] sm:$0xff] %v366_v43 }
 0x3a4   :  { %571 = shalt.err (!%p568_p4)
}
 0x3a5   :  { %s572_s8 = scalar_lea.hbm %s794_s4, 128 }
 0x3a6   :  { %p573_p5 = scmp.ne.s32.totalorder %s794_s4, %s572_s8  ;;  %p576_p6 = scmp.lt.u32.totalorder %s572_s8, %s794_s4 }
 0x3a8   :  { %p578_p7 = pnand %p576_p6, %p573_p5 }
 0x3aa   :  { %581 = shalt.err (!%p578_p7)
}
 0x3ab   :  { %377 = dma.vmem_to_hbm [thread:$0]  %s375_s3, 128, %s794_s4, [#allocation3]  }
 0x3ac   :  { %582 = dma.done.wait [#allocation3], 128  }
 0x3ad   :  { %583 = vsyncadd [#allocation3], 4294967168 }
 0x3ae   :  { %381 = vsyncpa [#allocation3], 1 }

</bundles_post_ra>
